<compile_context>
chip_gen: v5e
topology: v5e:2x2
jax: 0.10.0
libtpu: 0.0.40
codegen_flags: <defaults>
</compile_context>

<pallas_src>
import math

import jax
import jax.numpy as jnp
from jax.experimental import pallas as pl
from jax.experimental.pallas import tpu as pltpu


def _dytanh_kernel(x_ref, p_ref, o_ref):
    # Elementwise hot path: scale * tanh(alpha * x) + shift.
    # tanh -> EUP slot, mul/add -> VPU, kernel is HBM-bandwidth bound.
    x = x_ref[...]                  # (rows_per_tile, lane), x.dtype
    p = p_ref[...]                  # (3, lane), f32 — DMA'd once (const index)
    scale = p[0:1, :]
    shift = p[1:2, :]
    alpha = p[2:3, :]
    y = scale * jnp.tanh(alpha * x) + shift        # promotes to f32
    o_ref[...] = y.astype(o_ref.dtype)


# Below ~1 MiB a pallas_call's launch overhead loses to a fused XLA op.
_TINY_BYTES = 1 << 20
# Cap on the folded lane width (guards odd / huge D from blowing up VMEM).
_MAX_LANE = 16384


def _round_up(a, b):
    return -(-a // b) * b


def _vmem_budget():
    """Return (per-buffer tile bytes, scoped vmem limit), generation aware."""
    cap = 128 * 1024 * 1024
    try:
        info = pltpu.get_tpu_info()
        cap = int(getattr(info, "vmem_capacity_bytes", cap))
    except Exception:
        pass
    if cap >= 96 * 1024 * 1024:
        # v5e / v6e: 128 MiB physical VMEM.
        return 8 * 1024 * 1024, 64 * 1024 * 1024
    # v7x: 64 MiB physical per TC — keep 2x(in+out) buffers + params <= ~48 MiB.
    return 6 * 1024 * 1024, 48 * 1024 * 1024


def dytanh_batch(x, scale, shift, alpha, *, force_pallas=False):
    """x: (B, S, D); scale/shift/alpha: (1, 1, D). Returns (B, S, D)."""
    B, S, D = x.shape
    N = B * S
    itemsize = jnp.dtype(x.dtype).itemsize

    if not force_pallas and N * D * itemsize < _TINY_BYTES:
        # Too small to amortize a kernel launch; let XLA fuse it.
        return (scale * jnp.tanh(alpha * x) + shift).astype(x.dtype)

    # --- lane-dense folding: smallest k with (k * D) % 128 == 0 -------------
    k = 128 // math.gcd(D, 128)
    lane = k * D
    if k > 1 and lane > _MAX_LANE:
        # Awkward D (e.g. large odd D): don't fold.  Block last dim equals the
        # full array dim (legal) — stores are masked but VMEM stays bounded.
        k, lane = 1, D

    # --- fold rows into lanes (free reshape; tiny pad only if N % k != 0) ---
    x2 = x.reshape(N, D)
    n_pad = _round_up(N, k)
    if n_pad != N:
        x2 = jnp.pad(x2, ((0, n_pad - N), (0, 0)))      # at most k-1 rows
    rows_total = n_pad // k
    xf = x2.reshape(rows_total, lane)

    # --- pack params into one (3, lane) f32 array (single tiny DMA) ---------
    params = jnp.concatenate(
        [scale.reshape(1, D), shift.reshape(1, D), alpha.reshape(1, D)], axis=0
    ).astype(jnp.float32)
    if k > 1:
        params = jnp.tile(params, (1, k))   # lane j*D + d still maps to chan d

    # --- row tiling: dtype-aware sublane alignment, VMEM-budget sized -------
    target_tile_bytes, vmem_limit = _vmem_budget()
    align = max(8, 32 // itemsize)          # 8 f32, 16 bf16, 32 int8/fp8
    bytes_per_row = lane * itemsize
    rows_per_tile = max(align, (target_tile_bytes // bytes_per_row) // align * align)
    rows_per_tile = min(rows_per_tile, rows_total)   # == rows_total is legal
    if rows_per_tile >= rows_total and rows_total >= 2 * align:
        # Keep >= 2 grid steps so v7x's two TensorCores both get work
        # (harmless on single-TC v5e/v6e).
        rows_per_tile = _round_up(-(-rows_total // 2), align)

    grid = (pl.cdiv(rows_total, rows_per_tile),)   # ragged tail handled by Pallas

    out = pl.pallas_call(
        _dytanh_kernel,
        out_shape=jax.ShapeDtypeStruct((rows_total, lane), x.dtype),
        grid_spec=pltpu.PrefetchScalarGridSpec(
            num_scalar_prefetch=0,
            grid=grid,
            in_specs=[
                # x: one row tile per grid step.
                pl.BlockSpec((rows_per_tile, lane), lambda i: (i, 0)),
                # packed params: constant block index -> DMA'd once.
                pl.BlockSpec((3, lane), lambda i: (0, 0)),
            ],
            out_specs=pl.BlockSpec((rows_per_tile, lane), lambda i: (i, 0)),
        ),
        compiler_params=pltpu.CompilerParams(
            dimension_semantics=("parallel",),
            vmem_limit_bytes=vmem_limit,
        ),
    )(xf, params)

    if n_pad != N:
        return out.reshape(n_pad, D)[:N].reshape(B, S, D)
    return out.reshape(B, S, D)


def _reference(x, scale, shift, alpha):
    xf = x.astype(jnp.float32)
    return (scale.astype(jnp.float32) * jnp.tanh(alpha.astype(jnp.float32) * xf)
            + shift.astype(jnp.float32))


if __name__ == "__main__":
    key = jax.random.PRNGKey(0)
    k_x, k_scale, k_shift, k_alpha, k_x2, k_x3, k_x4 = jax.random.split(key, 7)

    mean, std = 0.1, 0.001

    # --- small shape consistent with the module (B=2, S=8, embed_dim=32) ----
    B, S, D = 2, 8, 32
    x = jax.random.normal(k_x, (B, S, D), dtype=jnp.float32)
    scale = jax.random.normal(k_scale, (1, 1, D), dtype=jnp.float32) * std + mean
    shift = jax.random.normal(k_shift, (1, 1, D), dtype=jnp.float32) * std + mean
    alpha = jax.random.normal(k_alpha, (1, 1, D), dtype=jnp.float32) * std + mean

    out = dytanh_batch(x, scale, shift, alpha, force_pallas=True)
    jax.block_until_ready(out)
    ref = _reference(x, scale, shift, alpha)
    assert out.shape == (B, S, D)
    assert jnp.allclose(out, ref, atol=1e-5, rtol=1e-5)

    # --- larger shape: lane-dense D (mult of 128), multi-step parallel grid --
    B2, S2, D2 = 4, 1024, 256
    x_big = jax.random.normal(k_x2, (B2, S2, D2), dtype=jnp.float32)
    sc2 = jnp.tile(scale, (1, 1, D2 // D))
    sh2 = jnp.tile(shift, (1, 1, D2 // D))
    al2 = jnp.tile(alpha, (1, 1, D2 // D))
    out_big = dytanh_batch(x_big, sc2, sh2, al2)
    jax.block_until_ready(out_big)
    assert jnp.allclose(out_big, _reference(x_big, sc2, sh2, al2), atol=1e-5, rtol=1e-5)

    # --- awkward D (not a multiple of 128) + N not a multiple of k -----------
    B3, S3, D3 = 2, 9, 96          # k = 4, lane = 384, N = 18 -> 2 pad rows
    x_odd = jax.random.normal(k_x3, (B3, S3, D3), dtype=jnp.float32)
    sc3 = jnp.tile(scale, (1, 1, D3 // D))
    sh3 = jnp.tile(shift, (1, 1, D3 // D))
    al3 = jnp.tile(alpha, (1, 1, D3 // D))
    out_odd = dytanh_batch(x_odd, sc3, sh3, al3, force_pallas=True)
    jax.block_until_ready(out_odd)
    assert out_odd.shape == (B3, S3, D3)
    assert jnp.allclose(out_odd, _reference(x_odd, sc3, sh3, al3), atol=1e-5, rtol=1e-5)

    # --- bf16 input (stays bf16 in HBM; f32 math in-kernel), loose tolerance -
    B4, S4, D4 = 2, 128, 192       # k = 2, lane = 384
    x_bf = jax.random.normal(k_x4, (B4, S4, D4), dtype=jnp.bfloat16)
    sc4 = jnp.tile(scale, (1, 1, D4 // D))
    sh4 = jnp.tile(shift, (1, 1, D4 // D))
    al4 = jnp.tile(alpha, (1, 1, D4 // D))
    out_bf = dytanh_batch(x_bf, sc4, sh4, al4, force_pallas=True)
    jax.block_until_ready(out_bf)
    assert out_bf.dtype == jnp.bfloat16
    assert jnp.allclose(out_bf.astype(jnp.float32), _reference(x_bf, sc4, sh4, al4),
                        atol=1e-2, rtol=1e-2)

    print("KERNEL_OK")
</pallas_src>

<mosaic_0001>
module attributes {stable_mosaic.version = 11 : i64} {
  func.func @_dytanh_kernel(%arg0: i32, %arg1: memref<4x128xf32, #tpu.memory_space<vmem>>, %arg2: memref<3x128xf32, #tpu.memory_space<vmem>>, %arg3: memref<4x128xf32, #tpu.memory_space<vmem>>) attributes {dimension_semantics = [#tpu.dimension_semantics<parallel>], iteration_bounds = array<i64: 1>, scalar_prefetch = 0 : i64, scratch_operands = 0 : i64, tpu.core_type = #tpu.core_type<tc>, window_params = [{transform_indices = @transform_0, window_bounds = array<i64: 4, 128>}, {pipeline_mode = #tpu.pipeline_mode<synchronous>, transform_indices = @transform_1, window_bounds = array<i64: 3, 128>}, {transform_indices = @transform_2, window_bounds = array<i64: 4, 128>}]} {
    %c0 = arith.constant 0 : index
    %c0_0 = arith.constant 0 : index
    %0 = vector.load %arg1[%c0, %c0_0] : memref<4x128xf32, #tpu.memory_space<vmem>>, vector<4x128xf32>
    %c0_1 = arith.constant 0 : index
    %c0_2 = arith.constant 0 : index
    %1 = vector.load %arg2[%c0_1, %c0_2] : memref<3x128xf32, #tpu.memory_space<vmem>>, vector<3x128xf32>
    %2 = vector.extract_strided_slice %1 {offsets = [0, 0], sizes = [1, 128], strides = [1, 1]} : vector<3x128xf32> to vector<1x128xf32>
    %3 = vector.extract_strided_slice %1 {offsets = [1, 0], sizes = [1, 128], strides = [1, 1]} : vector<3x128xf32> to vector<1x128xf32>
    %4 = vector.extract_strided_slice %1 {offsets = [2, 0], sizes = [1, 128], strides = [1, 1]} : vector<3x128xf32> to vector<1x128xf32>
    %5 = vector.broadcast %4 : vector<1x128xf32> to vector<4x128xf32>
    %6 = arith.mulf %5, %0 : vector<4x128xf32>
    %7 = math.tanh %6 : vector<4x128xf32>
    %8 = vector.broadcast %2 : vector<1x128xf32> to vector<4x128xf32>
    %9 = arith.mulf %8, %7 : vector<4x128xf32>
    %10 = vector.broadcast %3 : vector<1x128xf32> to vector<4x128xf32>
    %11 = arith.addf %9, %10 : vector<4x128xf32>
    %c0_3 = arith.constant 0 : index
    %c0_4 = arith.constant 0 : index
    %12 = vector.load %arg3[%c0_3, %c0_4] : memref<4x128xf32, #tpu.memory_space<vmem>>, vector<4x128xf32>
    tpu.vector_store %arg3[%c0_3, %c0_4], %11 {strides = array<i32>} : memref<4x128xf32, #tpu.memory_space<vmem>>, vector<4x128xf32>,
    return
  }
  func.func @transform_0(%arg0: i32) -> (i32, i32) {
    %c0_i32 = arith.constant 0 : i32
    %c0_i32_0 = arith.constant 0 : i32
    return %arg0, %c0_i32 : i32, i32
  }
  func.func @transform_1(%arg0: i32) -> (i32, i32) {
    %c0_i32 = arith.constant 0 : i32
    %c0_i32_0 = arith.constant 0 : i32
    %c0_i32_1 = arith.constant 0 : i32
    return %c0_i32, %c0_i32_0 : i32, i32
  }
  func.func @transform_2(%arg0: i32) -> (i32, i32) {
    %c0_i32 = arith.constant 0 : i32
    %c0_i32_0 = arith.constant 0 : i32
    return %arg0, %c0_i32 : i32, i32
  }
}

</mosaic_0001>

<bundles_post_ra>
// kernel: tpu_custom_call.1
= control target key start
LH: loop header
LB: loop body
LE: loop exit
PB: predicated region body
PF: predicated region fallthrough
CT: control target
= control target key end

     0   :  { %7 = vsyncpa [#allocation3], 0  ;;  %s178_s0 = inlined_call_operand.hbm [shape: f32[4,128], index: 0, kind: input, shape index: {}]   ;;  %s179_s1 = inlined_call_operand.hbm [shape: f32[3,128], index: 1, kind: input, shape index: {}]   ;;  %s180_s2 = inlined_call_operand.hbm [shape: f32[4,128], index: 2, kind: output, shape index: {}]  }
   0x1   :  { %8 = vsyncpa [#allocation6], 0 }
   0x2   :  { %9 = vsyncpa [#allocation4], 0  ;;  %s15_s11 = sshll.u32 %s178_s0, 4  ;;  %s151_s12 = smov [#allocation2]   ;;  %s16_s11 = int_to_ptr.hbm [resolvable:$true] %s15_s11 }
   0x3   :  { %s17_s13 = sshll.u32 %s151_s12, 4  ;;  %s26_s16 = sshll.u32 %s179_s1, 4  ;;  %s18_s13 = int_to_ptr.vmem [resolvable:$true] %s17_s13  ;;  %s27_s16 = int_to_ptr.hbm [resolvable:$true] %s26_s16 }
   0x4   :  { %20 = dma.hbm_to_vmem [thread:$0]  %s16_s11, 64, %s18_s13, [#allocation3]  }
   0x5   :  { %s152_s17 = smov [#allocation5]  }
   0x6   :  { %s28_s18 = sshll.u32 %s152_s17, 4  ;;  %s29_s18 = int_to_ptr.vmem [resolvable:$true] %s28_s18 }
   0x7   :  { %31 = dma.hbm_to_vmem [thread:$0]  %s27_s16, 64, %s29_s18, [#allocation6]  }
   0x8   :  { %145 = dma.done.wait [#allocation3], 64  }
   0x9   :  { %146 = vsyncadd [#allocation3], 4294967232 }
   0xa   :  { %147 = dma.done.wait [#allocation6], 64  }
   0xb   :  { %148 = vsyncadd [#allocation6], 4294967232  ;;  %v40_v0 = vld [vmem:[#allocation2] sm:$0xf]  ;;  %v41_v1 = vld [vmem:[#allocation5] sm:$0x7] }
   0xc   :  { %v42_v2 = vperm.slane %v41_v1, 2  ;;  %v45_v4 = vperm.slane %v41_v1, 0  ;;  %v47_v5 = vperm.slane %v41_v1, 1  ;;  %s153_s0 = smov [#allocation7]   ;;  %s57_s21 = sshll.u32 %s180_s2, 4  ;;  %s58_s21 = int_to_ptr.hbm [resolvable:$true] %s57_s21 }
   0xd   :  { %s55_s1 = sshll.u32 %s153_s0, 4  ;;  %s56_s1 = int_to_ptr.vmem [resolvable:$true] %s55_s1 }
   0xe   :  { %v43_v3 = vmul.f32 %v42_v2, %v40_v0 }
  0x10   :  { %71 = vtanh.f32 %v43_v3 }
  0x16   :  { %v72_v6 = vpop.eup %71 }
  0x17   :  { %v46_v7 = vmul.f32 %v72_v6, %v45_v4 }
  0x19   :  { %v48_v8 = vadd.f32 %v47_v5, %v46_v7 }
  0x1b   :  { %49 = vst [vmem:[#allocation7] sm:$0xf] %v48_v8 }
  0x1c   :  { %60 = dma.vmem_to_hbm [thread:$0]  %s56_s1, 64, %s58_s21, [#allocation4]  }
  0x1d   :  { %149 = dma.done.wait [#allocation4], 64  }
  0x1e   :  { %150 = vsyncadd [#allocation4], 4294967232 }
  0x1f   :  { %65 = vsyncpa [#allocation3], 1 }
  0x20   :  { %66 = vsyncpa [#allocation6], 1 }
  0x21   :  { %67 = vsyncpa [#allocation4], 1 }

</bundles_post_ra>
